<compile_context>
chip_gen: v7x
topology: tpu7x:2x2x1
jax: 0.10.0
libtpu: 0.0.40
codegen_flags: <defaults>
</compile_context>

<pallas_src>
import functools

import jax
import jax.numpy as jnp
from jax.experimental import pallas as pl
from jax.experimental.pallas import tpu as pltpu


def conv_add_relu_kernel(p_ref, w_ref, oth_ref, o_ref):
    # p_ref  : (Kpad, N*HW)   im2col patches (zero-padded K), lane dim = N*HW
    # w_ref  : (Cout, Kpad)   conv weights, K ordering = (kh*3+kw)*Cin + ci
    # oth_ref: (Cout, N*HW)   other + bias, laid out to match the matmul result
    # o_ref  : (N, Cout, HW)  output, already flattened-NCHW
    n_batch, _, hw = o_ref.shape

    # One MXU matmul for the whole batch.
    res = jnp.dot(w_ref[...], p_ref[...],
                  preferred_element_type=jnp.float32)          # (Cout, N*HW)
    y = jnp.maximum(res + oth_ref[...].astype(jnp.float32), 0.0)
    y = y.astype(o_ref.dtype)

    # Static, 128-lane-aligned per-batch stores (N is tiny).
    for n in range(n_batch):
        o_ref[n] = y[:, n * hw:(n + 1) * hw]


def _conv_add_relu_impl(x_nchw, other_nchw, w_oihw, bias):
    """v3 = relu(conv2d(x, w, b, stride=1, pad=1) + other), NCHW in/out."""
    N, Cin, H, W = x_nchw.shape
    Cout = w_oihw.shape[0]
    KH = KW = 3
    K = KH * KW * Cin
    HW = H * W
    Kpad = ((K + 63) // 64) * 64  # 54 -> 64: aligned contraction depth

    # ---- im2col in the wrapper (fused under jit) ------------------------
    # K index ordering = (kh*3 + kw)*Cin + ci ; lane index = n*HW + (h*W + w).
    x_pad = jnp.pad(x_nchw, ((0, 0), (0, 0), (1, 1), (1, 1)))
    taps = [x_pad[:, :, kh:kh + H, kw:kw + W]
            for kh in range(KH) for kw in range(KW)]            # each (N,Cin,H,W)
    p = jnp.stack(taps, axis=0)                                  # (9, N, Cin, H, W)
    p = jnp.transpose(p, (0, 2, 1, 3, 4))                        # (9, Cin, N, H, W)
    patches = p.reshape(K, N * HW)
    patches = jnp.pad(patches, ((0, Kpad - K), (0, 0)))          # (Kpad, N*HW)

    # Weights (Cout, Cin, 3, 3) -> (Cout, Kpad) with matching K ordering.
    w_mat = jnp.transpose(w_oihw, (0, 2, 3, 1)).reshape(Cout, K)
    w_mat = jnp.pad(w_mat, ((0, 0), (0, Kpad - K)))              # (Cout, Kpad)

    # `other` may or may not carry a batch dim; broadcast explicitly, fold bias.
    if other_nchw.ndim == 3:
        other_nchw = other_nchw[None]
    assert other_nchw.shape[0] in (1, N), (
        f"`other` batch dim {other_nchw.shape[0]} incompatible with N={N}")
    other_b = jnp.broadcast_to(other_nchw, (N, Cout, H, W))
    oth = jnp.transpose(other_b.reshape(N, Cout, HW), (1, 0, 2)).reshape(Cout, N * HW)
    oth = oth + bias.reshape(Cout, 1)                            # (Cout, N*HW)

    # ---- single-invocation Pallas call (no grid -> no pipeline overhead) --
    out = pl.pallas_call(
        conv_add_relu_kernel,
        out_shape=jax.ShapeDtypeStruct((N, Cout, HW), x_nchw.dtype),
        in_specs=[
            pl.BlockSpec(memory_space=pltpu.MemorySpace.VMEM),
            pl.BlockSpec(memory_space=pltpu.MemorySpace.VMEM),
            pl.BlockSpec(memory_space=pltpu.MemorySpace.VMEM),
        ],
        out_specs=pl.BlockSpec(memory_space=pltpu.MemorySpace.VMEM),
    )(patches, w_mat, oth)

    return out.reshape(N, Cout, H, W)  # free reshape, already NCHW


# jit so the im2col / weight-reshape / bias-fold fuse next to the pallas_call.
conv_add_relu = jax.jit(_conv_add_relu_impl)


def _reference(x_nchw, other_nchw, w_oihw, bias):
    out = jax.lax.conv_general_dilated(
        x_nchw, w_oihw, window_strides=(1, 1), padding=((1, 1), (1, 1)),
        dimension_numbers=("NCHW", "OIHW", "NCHW"),
    ) + bias.reshape(1, -1, 1, 1)
    return jnp.maximum(out + other_nchw, 0.0)


if __name__ == "__main__":
    key = jax.random.PRNGKey(0)
    k_x, k_o, k_w, k_b = jax.random.split(key, 4)

    # Small shapes consistent with the module: Conv2d(6->16, 3x3, s1, p1),
    # `other` broadcasts over batch.
    N, Cin, Cout, H, W = 2, 6, 16, 16, 16
    x = jax.random.normal(k_x, (N, Cin, H, W), jnp.float32)
    other = jax.random.normal(k_o, (1, Cout, H, W), jnp.float32)
    w = jax.random.normal(k_w, (Cout, Cin, 3, 3), jnp.float32) * 0.1
    b = jax.random.normal(k_b, (Cout,), jnp.float32) * 0.1

    out = conv_add_relu(x, other, w, b)
    jax.block_until_ready(out)

    ref = _reference(x, other, w, b)
    assert out.shape == (N, Cout, H, W)
    assert jnp.allclose(out, ref, atol=1e-4, rtol=1e-4), "mismatch vs reference conv"

    print("KERNEL_OK")
</pallas_src>

<mosaic_0001>
module attributes {stable_mosaic.version = 11 : i64} {
  func.func @conv_add_relu_kernel(%arg0: memref<64x512xf32, #tpu.memory_space<vmem>>, %arg1: memref<16x64xf32, #tpu.memory_space<vmem>>, %arg2: memref<16x512xf32, #tpu.memory_space<vmem>>, %arg3: memref<2x16x256xf32, #tpu.memory_space<vmem>>) attributes {dimension_semantics = [], scalar_prefetch = 0 : i64, scratch_operands = 0 : i64, tpu.core_type = #tpu.core_type<tc>} {
    %c0 = arith.constant 0 : index
    %c0_0 = arith.constant 0 : index
    %0 = vector.load %arg1[%c0, %c0_0] : memref<16x64xf32, #tpu.memory_space<vmem>>, vector<16x64xf32>
    %c0_1 = arith.constant 0 : index
    %c0_2 = arith.constant 0 : index
    %1 = vector.load %arg0[%c0_1, %c0_2] : memref<64x512xf32, #tpu.memory_space<vmem>>, vector<64x512xf32>
    %cst = arith.constant dense<0.000000e+00> : vector<16x512xf32>
    %2 = tpu.matmul %0, %1, %cst {dimension_numbers = #tpu.dot_dimension_numbers<[1], [0], [0], [1], [0, 0, 1, 1], [], []>} : vector<16x64xf32>, vector<64x512xf32>, vector<16x512xf32> -> vector<16x512xf32>
    %c0_3 = arith.constant 0 : index
    %c0_4 = arith.constant 0 : index
    %3 = vector.load %arg2[%c0_3, %c0_4] : memref<16x512xf32, #tpu.memory_space<vmem>>, vector<16x512xf32>
    %4 = arith.addf %2, %3 : vector<16x512xf32>
    %cst_5 = arith.constant 0.000000e+00 : f32
    %5 = vector.broadcast %cst_5 : f32 to vector<16x512xf32>
    %6 = arith.maximumf %4, %5 : vector<16x512xf32>
    %7 = vector.extract_strided_slice %6 {offsets = [0, 0], sizes = [16, 256], strides = [1, 1]} : vector<16x512xf32> to vector<16x256xf32>
    %c0_6 = arith.constant 0 : index
    %c0_7 = arith.constant 0 : index
    %c0_8 = arith.constant 0 : index
    %8 = vector.load %arg3[%c0_6, %c0_7, %c0_8] : memref<2x16x256xf32, #tpu.memory_space<vmem>>, vector<1x16x256xf32>
    %9 = vector.shape_cast %8 : vector<1x16x256xf32> to vector<16x256xf32>
    %10 = vector.shape_cast %7 : vector<16x256xf32> to vector<1x16x256xf32>
    tpu.vector_store %arg3[%c0_6, %c0_7, %c0_8], %10 {strides = array<i32>} : memref<2x16x256xf32, #tpu.memory_space<vmem>>, vector<1x16x256xf32>,
    %11 = vector.extract_strided_slice %6 {offsets = [0, 256], sizes = [16, 256], strides = [1, 1]} : vector<16x512xf32> to vector<16x256xf32>
    %c1 = arith.constant 1 : index
    %c0_9 = arith.constant 0 : index
    %c0_10 = arith.constant 0 : index
    %12 = vector.load %arg3[%c1, %c0_9, %c0_10] : memref<2x16x256xf32, #tpu.memory_space<vmem>>, vector<1x16x256xf32>
    %13 = vector.shape_cast %12 : vector<1x16x256xf32> to vector<16x256xf32>
    %14 = vector.shape_cast %11 : vector<16x256xf32> to vector<1x16x256xf32>
    tpu.vector_store %arg3[%c1, %c0_9, %c0_10], %14 {strides = array<i32>} : memref<2x16x256xf32, #tpu.memory_space<vmem>>, vector<1x16x256xf32>,
    return
  }
}

</mosaic_0001>

<bundles_post_ra>
// kernel: _conv_add_relu_impl.1
= control target key start
LH: loop header
LB: loop body
LE: loop exit
PB: predicated region body
PF: predicated region fallthrough
CT: control target
= control target key end

     0   :  { %v279_v3 = vmov 0.0   ;;  %vm56_vm0 = vcmask 523264   ;;  %s454_s0 = inlined_call_operand.vmem [shape: f32[64,512], index: 0, kind: input, shape index: {}]   ;;  %s455_s1 = inlined_call_operand.vmem [shape: f32[16,64], index: 1, kind: input, shape index: {}]   ;;  %s456_s2 = inlined_call_operand.vmem [shape: f32[16,512], index: 2, kind: input, shape index: {}]   ;;  %s457_s3 = inlined_call_operand.vmem [shape: f32[2,16,256], index: 3, kind: output, shape index: {}]  }
   0x1   :  { %v17_v0 = vld [vmem:[%s454_s0 + $0x8] sm:$0xff]  ;;  %v19_v2 = vld [vmem:[%s454_s0 + $0x18] sm:$0xff]  ;;  %127 = vmatprep.mubr.f32.mxu0 %v279_v3  ;;  %204 = vmatprep.mubr.f32.mxu1 %v279_v3  ;;  %v16_v6 = vld [vmem:[%s454_s0] sm:$0xff] }
   0x2   :  { %v21_v1 = vld [vmem:[%s454_s0 + $0x28] sm:$0xff]  ;;  %v23_v5 = vld [vmem:[%s454_s0 + $0x38] sm:$0xff]  ;;  %v20_v7 = vld [vmem:[%s454_s0 + $0x20] sm:$0xff] }
   0x3   :  { %v246_v4 = vpack.c.bf16 %v21_v1, %v17_v0  ;;  %v262_v8 = vpack.c.bf16 %v23_v5, %v19_v2  ;;  %v248_v9 = vpack.c.bf16 %v20_v7, %v16_v6  ;;  %v18_v10 = vld [vmem:[%s454_s0 + $0x10] sm:$0xff]  ;;  %v25_v12 = vld [vmem:[%s454_s0 + $0x48] sm:$0xff]  ;;  %v27_v15 = vld [vmem:[%s454_s0 + $0x58] sm:$0xff] }
   0x4   :  { %v22_v11 = vld [vmem:[%s454_s0 + $0x30] sm:$0xff]  ;;  %v29_v14 = vld [vmem:[%s454_s0 + $0x68] sm:$0xff]  ;;  %v31_v16 = vld [vmem:[%s454_s0 + $0x78] sm:$0xff] }
   0x5   :  { %247 = vmatprep.subr.bf16.mxu0 %v246_v4  ;;  %v264_v13 = vpack.c.bf16 %v22_v11, %v18_v10  ;;  %263 = vmatprep.subr.bf16.mxu1 %v262_v8  ;;  %v250_v17 = vpack.c.bf16 %v29_v14, %v25_v12  ;;  %v266_v18 = vpack.c.bf16 %v31_v16, %v27_v15  ;;  %v24_v19 = vld [vmem:[%s454_s0 + $0x40] sm:$0xff]  ;;  %v26_v21 = vld [vmem:[%s454_s0 + $0x50] sm:$0xff]  ;;  %v33_v24 = vld [vmem:[%s454_s0 + $0x88] sm:$0xff] }
   0x6   :  { %249 = vmatpush1.bf16.msra.mxu0 %v248_v9  ;;  %v28_v20 = vld [vmem:[%s454_s0 + $0x60] sm:$0xff]  ;;  %v30_v23 = vld [vmem:[%s454_s0 + $0x70] sm:$0xff]  ;;  %v37_v25 = vld [vmem:[%s454_s0 + $0xa8] sm:$0xff] }
   0x7   :  { %265 = vmatpush1.bf16.msra.mxu1 %v264_v13  ;;  %v252_v22 = vpack.c.bf16 %v28_v20, %v24_v19  ;;  %251 = vmatprep.subr.bf16.mxu0 %v250_v17  ;;  %v268_v26 = vpack.c.bf16 %v30_v23, %v26_v21  ;;  %v254_v27 = vpack.c.bf16 %v37_v25, %v33_v24  ;;  %v35_v28 = vld [vmem:[%s454_s0 + $0x98] sm:$0xff]  ;;  %v32_v30 = vld [vmem:[%s454_s0 + $0x80] sm:$0xff]  ;;  %v34_v33 = vld [vmem:[%s454_s0 + $0x90] sm:$0xff] }
   0x8   :  { %267 = vmatprep.subr.bf16.mxu1 %v266_v18  ;;  %v39_v29 = vld [vmem:[%s454_s0 + $0xb8] sm:$0xff]  ;;  %v36_v32 = vld [vmem:[%s454_s0 + $0xa0] sm:$0xff]  ;;  %v38_v34 = vld [vmem:[%s454_s0 + $0xb0] sm:$0xff] }
   0x9   :  { %v270_v31 = vpack.c.bf16 %v39_v29, %v35_v28  ;;  %v256_v35 = vpack.c.bf16 %v36_v32, %v32_v30  ;;  %v41_v36 = vld [vmem:[%s454_s0 + $0xc8] sm:$0xff]  ;;  %v43_v38 = vld [vmem:[%s454_s0 + $0xd8] sm:$0xff]  ;;  %v272_v39 = vpack.c.bf16 %v38_v34, %v34_v33  ;;  %v40_v42 = vld [vmem:[%s454_s0 + $0xc0] sm:$0xff] }
   0xa   :  { %253 = vmatpush1.bf16.msra.mxu0 %v252_v22  ;;  %v45_v37 = vld [vmem:[%s454_s0 + $0xe8] sm:$0xff]  ;;  %v47_v41 = vld [vmem:[%s454_s0 + $0xf8] sm:$0xff]  ;;  %v44_v43 = vld [vmem:[%s454_s0 + $0xe0] sm:$0xff] }
   0xb   :  { %269 = vmatpush1.bf16.msra.mxu1 %v268_v26  ;;  %255 = vmatprep.subr.bf16.mxu0 %v254_v27  ;;  %v258_v40 = vpack.c.bf16 %v45_v37, %v41_v36  ;;  %v274_v44 = vpack.c.bf16 %v47_v41, %v43_v38  ;;  %v42_v45 = vld [vmem:[%s454_s0 + $0xd0] sm:$0xff]  ;;  %v260_v47 = vpack.c.bf16 %v44_v43, %v40_v42  ;;  %v14_v49 = vld [vmem:[%s455_s1] sm:$0xff]  ;;  %v15_v50 = vld [vmem:[%s455_s1 + $0x8] sm:$0xff] }
   0xc   :  { %271 = vmatprep.subr.bf16.mxu1 %v270_v31  ;;  %v46_v46 = vld [vmem:[%s454_s0 + $0xf0] sm:$0xff]  ;;  %v48_v51 = vld [vmem:[%s456_s2] sm:$0xff]  ;;  %v49_v53 = vld [vmem:[%s456_s2 + $0x8] sm:$0xff] }
   0xd   :  { %v276_v48 = vpack.c.bf16 %v46_v46, %v42_v45  ;;  %v50_v52 = vld [vmem:[%s456_s2 + $0x10] sm:$0xff]  ;;  %v51_v55 = vld [vmem:[%s456_s2 + $0x18] sm:$0xff]  ;;  %v52_v62 = vld [vmem:[%s456_s2 + $0x20] sm:$0xff] }
   0xe   :  { %257 = vmatpush1.bf16.msra.mxu0 %v256_v35  ;;  %v54_v1 = vld [vmem:[%s456_s2 + $0x30] sm:$0xff]  ;;  %v53_v2 = vld [vmem:[%s456_s2 + $0x28] sm:$0xff]  ;;  %v55_v6 = vld [vmem:[%s456_s2 + $0x38] sm:$0xff] }
   0xf   :  { %273 = vmatpush1.bf16.msra.mxu1 %v272_v39  ;;  %259 = vmatprep.subr.bf16.mxu0 %v258_v40 }
  0x10   :  { %275 = vmatprep.subr.bf16.mxu1 %v274_v44 }
  0x12   :  { %261 = vmatpush1.bf16.msra.mxu0 %v260_v47 }
  0x13   :  { %277 = vmatpush1.bf16.msra.mxu1 %v276_v48 }
  0x15   :  { %238 = vmatmul.mubr.msk.f32.vlgmr.msra.gmra.mrb[0].mxu0 %vm56_vm0, %v14_v49 }
  0x16   :  { %240 = vmatmul.mubr.msk.f32.vlgmr.msra.gmra.mrb[0].mxu1 %vm56_vm0, %v14_v49  ;;  %133 = vmatprep.mubr.f32.mxu0 %v279_v3 }
  0x17   :  { %210 = vmatprep.mubr.f32.mxu1 %v279_v3 }
  0x19   :  { %239 = vmatmul.mubr.msk.f32.gmra.mrb[2].mxu0 %vm56_vm0, %v15_v50 }
  0x1a   :  { %241 = vmatmul.mubr.msk.f32.gmra.mrb[2].mxu1 %vm56_vm0, %v15_v50 }
  0xe8   :  { %v129_v54 = vpop.f32.mrb[0].mxu0 }
  0xe9   :  { %v130_v56 = vadd.f32 %v129_v54, %v48_v51  ;;  %v206_v57 = vpop.f32.mrb[0].mxu1  ;;  %v131_v58 = vpop.f32.mrb[1].mxu0 }
  0xea   :  { %v207_v59 = vadd.f32 %v206_v57, %v50_v52  ;;  %v132_v60 = vadd.f32 %v131_v58, %v49_v53  ;;  %v208_v61 = vpop.f32.mrb[1].mxu1 }
  0xeb   :  { %v217_v63 = vmax.f32 %v130_v56, 0.0  ;;  %v209_v0 = vadd.f32 %v208_v61, %v51_v55 }
  0xec   :  { %v219_v3 = vmax.f32 %v207_v59, 0.0  ;;  %v218_v4 = vmax.f32 %v132_v60, 0.0  ;;  %v135_v5 = vpop.f32.mrb[2].mxu0 }
  0xed   :  { %225 = vst [vmem:[%s457_s3] sm:$0xff] %v217_v63  ;;  %v220_v7 = vmax.f32 %v209_v0, 0.0  ;;  %v136_v8 = vadd.f32 %v135_v5, %v52_v62  ;;  %v212_v9 = vpop.f32.mrb[2].mxu1  ;;  %v137_v10 = vpop.f32.mrb[3].mxu0 }
  0xee   :  { %242 = vst [vmem:[%s457_s3 + $0x20] sm:$0xff] %v219_v3  ;;  %226 = vst [vmem:[%s457_s3 + $0x8] sm:$0xff] %v218_v4  ;;  %v213_v11 = vadd.f32 %v212_v9, %v54_v1  ;;  %v138_v12 = vadd.f32 %v137_v10, %v53_v2  ;;  %v214_v13 = vpop.f32.mrb[3].mxu1 }
  0xef   :  { %243 = vst [vmem:[%s457_s3 + $0x28] sm:$0xff] %v220_v7  ;;  %v221_v14 = vmax.f32 %v136_v8, 0.0  ;;  %v215_v15 = vadd.f32 %v214_v13, %v55_v6 }
  0xf0   :  { %v223_v16 = vmax.f32 %v213_v11, 0.0  ;;  %v222_v17 = vmax.f32 %v138_v12, 0.0 }
  0xf1   :  { %227 = vst [vmem:[%s457_s3 + $0x10] sm:$0xff] %v221_v14  ;;  %v224_v18 = vmax.f32 %v215_v15, 0.0 }
  0xf2   :  { %244 = vst [vmem:[%s457_s3 + $0x30] sm:$0xff] %v223_v16  ;;  %228 = vst [vmem:[%s457_s3 + $0x18] sm:$0xff] %v222_v17 }
  0xf3   :  { %245 = vst [vmem:[%s457_s3 + $0x38] sm:$0xff] %v224_v18 }

</bundles_post_ra>
